<compile_context>
chip_gen: v7x
topology: tpu7x:2x2x1
jax: 0.10.0
libtpu: 0.0.40
codegen_flags: <defaults>
</compile_context>

<pallas_src>
import jax
import jax.numpy as jnp
import numpy as np
from jax.experimental import pallas as pl
from jax.experimental.pallas import tpu as pltpu


def mlp_kernel(x_ref, *refs):
    """refs = (W1, b1, W2, b2, ..., WL, bL, out). Layer count is static."""
    *wb_refs, out_ref = refs
    n_layers = len(wb_refs) // 2

    h = x_ref[...]                                        # (TN, D_in) f32
    for l in range(n_layers):                             # static Python loop
        w = wb_refs[2 * l][...]                           # (D_{l-1}, D_l)
        b = wb_refs[2 * l + 1][...]                       # (1, D_l)
        h = jnp.dot(h, w,
                    preferred_element_type=jnp.float32,
                    precision=jax.lax.Precision.HIGHEST) + b
        h = jnp.maximum(h, 0.0)                           # every layer (incl. last) has ReLU
    out_ref[...] = h.astype(out_ref.dtype)


def mlp_forward(x, weights, biases, *, block_n=256):
    """Fused MLP forward. `weights[l]`: (D_{l-1}, D_l); `biases[l]`: (1, D_l)."""
    N, D_in = x.shape
    D_out = weights[-1].shape[1]

    # Tile the batch. block_n must be a multiple of 8 (sublane) or equal N.
    block_n = min(block_n, N)
    if block_n < N:
        block_n = max(8, (block_n // 8) * 8)
    grid = (pl.cdiv(N, block_n),)

    in_specs = [pl.BlockSpec((block_n, D_in), lambda i: (i, 0))]
    args = [x.astype(jnp.float32)]
    for w, b in zip(weights, biases):
        # Full-extent blocks, constant index_map -> stay resident in VMEM.
        in_specs.append(pl.BlockSpec(w.shape, lambda i: (0, 0)))
        in_specs.append(pl.BlockSpec(b.shape, lambda i: (0, 0)))
        args.append(w.astype(jnp.float32))
        args.append(b.astype(jnp.float32))

    return pl.pallas_call(
        mlp_kernel,
        grid=grid,
        in_specs=in_specs,
        out_specs=pl.BlockSpec((block_n, D_out), lambda i: (i, 0)),
        out_shape=jax.ShapeDtypeStruct((N, D_out), jnp.float32),
        compiler_params=pltpu.CompilerParams(
            dimension_semantics=("parallel",)),
    )(*args)


def fold_batchnorm(W, b, gamma, beta, mean, var, eps):
    """Fold inference-mode BatchNorm1d into the preceding Linear."""
    scale = gamma / jnp.sqrt(var + eps)                   # (H,)
    Wf = W * scale[None, :]
    bf = (b - mean[None, :]) * scale[None, :] + beta[None, :]
    return Wf, bf


def reference_forward(x, Ws, bs, bn_params, eps):
    """Pure-JAX reference: un-fused Linear + BatchNorm(running stats) + ReLU."""
    h = x
    n_hidden = len(Ws) - 1
    for l in range(n_hidden):
        h = jnp.dot(h, Ws[l], precision=jax.lax.Precision.HIGHEST) + bs[l]
        g, be, m, v = bn_params[l]
        h = g * (h - m) / jnp.sqrt(v + eps) + be
        h = jax.nn.relu(h)
        # Dropout: identity at inference.
    h = jnp.dot(h, Ws[-1], precision=jax.lax.Precision.HIGHEST) + bs[-1]
    return jax.nn.relu(h)


if __name__ == "__main__":
    # Small shapes consistent with MultiLayerPerceptron(input_dim, hidden_dims,
    # output_dim, batchnorm=True, dropout=0.2) on x: (N, emb_dim).
    N = 16
    input_dim = 32
    hidden_dims = (64, 32)
    output_dim = 16
    eps = 1e-5

    key = jax.random.PRNGKey(0)
    kx, key = jax.random.split(key)
    x = jax.random.normal(kx, (N, input_dim), dtype=jnp.float32)

    # Linear parameters (PyTorch-style uniform init, W stored as (in, out)).
    dims = (input_dim,) + hidden_dims + (output_dim,)
    Ws, bs = [], []
    for l in range(len(dims) - 1):
        fan_in, fan_out = dims[l], dims[l + 1]
        kw, kb, key = jax.random.split(key, 3)
        bound = 1.0 / float(np.sqrt(fan_in))
        Ws.append(jax.random.uniform(kw, (fan_in, fan_out),
                                     minval=-bound, maxval=bound,
                                     dtype=jnp.float32))
        bs.append(jax.random.uniform(kb, (1, fan_out),
                                     minval=-bound, maxval=bound,
                                     dtype=jnp.float32))

    # BatchNorm1d running-stat parameters for the hidden layers.
    bn_params = []
    for h in hidden_dims:
        kg, kbeta, km, kv, key = jax.random.split(key, 5)
        gamma = jax.random.uniform(kg, (h,), minval=0.5, maxval=1.5,
                                   dtype=jnp.float32)
        beta = 0.1 * jax.random.normal(kbeta, (h,), dtype=jnp.float32)
        mean = 0.1 * jax.random.normal(km, (h,), dtype=jnp.float32)
        var = jax.random.uniform(kv, (h,), minval=0.5, maxval=1.5,
                                 dtype=jnp.float32)
        bn_params.append((gamma, beta, mean, var))

    # Fold BN into the hidden Linears (inference mode); last Linear unchanged.
    Wf, bf = [], []
    for l in range(len(Ws)):
        if l < len(hidden_dims):
            g, be, m, v = bn_params[l]
            wl, bl = fold_batchnorm(Ws[l], bs[l], g, be, m, v, eps)
        else:
            wl, bl = Ws[l], bs[l]
        Wf.append(wl)
        bf.append(bl)

    out = mlp_forward(x, Wf, bf, block_n=8)   # grid of 2 batch tiles
    jax.block_until_ready(out)

    ref = reference_forward(x, Ws, bs, bn_params, eps)
    np.testing.assert_allclose(np.asarray(out), np.asarray(ref),
                               rtol=1e-4, atol=1e-4)
    print("KERNEL_OK")
</pallas_src>

<mosaic_0001>
module attributes {stable_mosaic.version = 11 : i64} {
  func.func @mlp_kernel(%arg0: i32, %arg1: memref<8x32xf32, #tpu.memory_space<vmem>>, %arg2: memref<32x64xf32, #tpu.memory_space<vmem>>, %arg3: memref<1x64xf32, #tpu.memory_space<vmem>>, %arg4: memref<64x32xf32, #tpu.memory_space<vmem>>, %arg5: memref<1x32xf32, #tpu.memory_space<vmem>>, %arg6: memref<32x16xf32, #tpu.memory_space<vmem>>, %arg7: memref<1x16xf32, #tpu.memory_space<vmem>>, %arg8: memref<8x16xf32, #tpu.memory_space<vmem>>) attributes {dimension_semantics = [#tpu.dimension_semantics<parallel>], iteration_bounds = array<i64: 2>, scalar_prefetch = 0 : i64, scratch_operands = 0 : i64, tpu.core_type = #tpu.core_type<tc>, window_params = [{transform_indices = @transform_0, window_bounds = array<i64: 8, 32>}, {pipeline_mode = #tpu.pipeline_mode<synchronous>, transform_indices = @transform_1, window_bounds = array<i64: 32, 64>}, {pipeline_mode = #tpu.pipeline_mode<synchronous>, transform_indices = @transform_2, window_bounds = array<i64: 1, 64>}, {pipeline_mode = #tpu.pipeline_mode<synchronous>, transform_indices = @transform_3, window_bounds = array<i64: 64, 32>}, {pipeline_mode = #tpu.pipeline_mode<synchronous>, transform_indices = @transform_4, window_bounds = array<i64: 1, 32>}, {pipeline_mode = #tpu.pipeline_mode<synchronous>, transform_indices = @transform_5, window_bounds = array<i64: 32, 16>}, {pipeline_mode = #tpu.pipeline_mode<synchronous>, transform_indices = @transform_6, window_bounds = array<i64: 1, 16>}, {transform_indices = @transform_7, window_bounds = array<i64: 8, 16>}]} {
    %c0 = arith.constant 0 : index
    %c0_0 = arith.constant 0 : index
    %0 = vector.load %arg1[%c0, %c0_0] : memref<8x32xf32, #tpu.memory_space<vmem>>, vector<8x32xf32>
    %c0_1 = arith.constant 0 : index
    %c0_2 = arith.constant 0 : index
    %1 = vector.load %arg2[%c0_1, %c0_2] : memref<32x64xf32, #tpu.memory_space<vmem>>, vector<32x64xf32>
    %c0_3 = arith.constant 0 : index
    %c0_4 = arith.constant 0 : index
    %2 = vector.load %arg3[%c0_3, %c0_4] : memref<1x64xf32, #tpu.memory_space<vmem>>, vector<1x64xf32>
    %cst = arith.constant dense<0.000000e+00> : vector<8x64xf32>
    %3 = tpu.matmul %0, %1, %cst {dimension_numbers = #tpu.dot_dimension_numbers<[1], [0], [0], [1], [0, 0, 1, 1], [], []>, precision = #tpu.contract_precision<fp32>} : vector<8x32xf32>, vector<32x64xf32>, vector<8x64xf32> -> vector<8x64xf32>
    %4 = vector.broadcast %2 : vector<1x64xf32> to vector<8x64xf32>
    %5 = arith.addf %3, %4 : vector<8x64xf32>
    %cst_5 = arith.constant 0.000000e+00 : f32
    %6 = vector.broadcast %cst_5 : f32 to vector<8x64xf32>
    %7 = arith.maximumf %5, %6 : vector<8x64xf32>
    %c0_6 = arith.constant 0 : index
    %c0_7 = arith.constant 0 : index
    %8 = vector.load %arg4[%c0_6, %c0_7] : memref<64x32xf32, #tpu.memory_space<vmem>>, vector<64x32xf32>
    %c0_8 = arith.constant 0 : index
    %c0_9 = arith.constant 0 : index
    %9 = vector.load %arg5[%c0_8, %c0_9] : memref<1x32xf32, #tpu.memory_space<vmem>>, vector<1x32xf32>
    %cst_10 = arith.constant dense<0.000000e+00> : vector<8x32xf32>
    %10 = tpu.matmul %7, %8, %cst_10 {dimension_numbers = #tpu.dot_dimension_numbers<[1], [0], [0], [1], [0, 0, 1, 1], [], []>, precision = #tpu.contract_precision<fp32>} : vector<8x64xf32>, vector<64x32xf32>, vector<8x32xf32> -> vector<8x32xf32>
    %11 = vector.broadcast %9 : vector<1x32xf32> to vector<8x32xf32>
    %12 = arith.addf %10, %11 : vector<8x32xf32>
    %cst_11 = arith.constant 0.000000e+00 : f32
    %13 = vector.broadcast %cst_11 : f32 to vector<8x32xf32>
    %14 = arith.maximumf %12, %13 : vector<8x32xf32>
    %c0_12 = arith.constant 0 : index
    %c0_13 = arith.constant 0 : index
    %15 = vector.load %arg6[%c0_12, %c0_13] : memref<32x16xf32, #tpu.memory_space<vmem>>, vector<32x16xf32>
    %c0_14 = arith.constant 0 : index
    %c0_15 = arith.constant 0 : index
    %16 = vector.load %arg7[%c0_14, %c0_15] : memref<1x16xf32, #tpu.memory_space<vmem>>, vector<1x16xf32>
    %cst_16 = arith.constant dense<0.000000e+00> : vector<8x16xf32>
    %17 = tpu.matmul %14, %15, %cst_16 {dimension_numbers = #tpu.dot_dimension_numbers<[1], [0], [0], [1], [0, 0, 1, 1], [], []>, precision = #tpu.contract_precision<fp32>} : vector<8x32xf32>, vector<32x16xf32>, vector<8x16xf32> -> vector<8x16xf32>
    %18 = vector.broadcast %16 : vector<1x16xf32> to vector<8x16xf32>
    %19 = arith.addf %17, %18 : vector<8x16xf32>
    %cst_17 = arith.constant 0.000000e+00 : f32
    %20 = vector.broadcast %cst_17 : f32 to vector<8x16xf32>
    %21 = arith.maximumf %19, %20 : vector<8x16xf32>
    %c0_18 = arith.constant 0 : index
    %c0_19 = arith.constant 0 : index
    %22 = vector.load %arg8[%c0_18, %c0_19] : memref<8x16xf32, #tpu.memory_space<vmem>>, vector<8x16xf32>
    tpu.vector_store %arg8[%c0_18, %c0_19], %21 {strides = array<i32>} : memref<8x16xf32, #tpu.memory_space<vmem>>, vector<8x16xf32>,
    return
  }
  func.func @transform_0(%arg0: i32) -> (i32, i32) {
    %c0_i32 = arith.constant 0 : i32
    %c0_i32_0 = arith.constant 0 : i32
    return %arg0, %c0_i32 : i32, i32
  }
  func.func @transform_1(%arg0: i32) -> (i32, i32) {
    %c0_i32 = arith.constant 0 : i32
    %c0_i32_0 = arith.constant 0 : i32
    %c0_i32_1 = arith.constant 0 : i32
    return %c0_i32, %c0_i32_0 : i32, i32
  }
  func.func @transform_2(%arg0: i32) -> (i32, i32) {
    %c0_i32 = arith.constant 0 : i32
    %c0_i32_0 = arith.constant 0 : i32
    %c0_i32_1 = arith.constant 0 : i32
    return %c0_i32, %c0_i32_0 : i32, i32
  }
  func.func @transform_3(%arg0: i32) -> (i32, i32) {
    %c0_i32 = arith.constant 0 : i32
    %c0_i32_0 = arith.constant 0 : i32
    %c0_i32_1 = arith.constant 0 : i32
    return %c0_i32, %c0_i32_0 : i32, i32
  }
  func.func @transform_4(%arg0: i32) -> (i32, i32) {
    %c0_i32 = arith.constant 0 : i32
    %c0_i32_0 = arith.constant 0 : i32
    %c0_i32_1 = arith.constant 0 : i32
    return %c0_i32, %c0_i32_0 : i32, i32
  }
  func.func @transform_5(%arg0: i32) -> (i32, i32) {
    %c0_i32 = arith.constant 0 : i32
    %c0_i32_0 = arith.constant 0 : i32
    %c0_i32_1 = arith.constant 0 : i32
    return %c0_i32, %c0_i32_0 : i32, i32
  }
  func.func @transform_6(%arg0: i32) -> (i32, i32) {
    %c0_i32 = arith.constant 0 : i32
    %c0_i32_0 = arith.constant 0 : i32
    %c0_i32_1 = arith.constant 0 : i32
    return %c0_i32, %c0_i32_0 : i32, i32
  }
  func.func @transform_7(%arg0: i32) -> (i32, i32) {
    %c0_i32 = arith.constant 0 : i32
    %c0_i32_0 = arith.constant 0 : i32
    return %arg0, %c0_i32 : i32, i32
  }
}

</mosaic_0001>

<bundles_post_ra>
// kernel: tpu_custom_call.1
= control target key start
LH: loop header
LB: loop body
LE: loop exit
PB: predicated region body
PF: predicated region fallthrough
CT: control target
= control target key end

     0   :  { %12 = vsyncpa [#allocation3], 0  ;;  %s2921_s0 = inlined_call_operand.vmem [shape: f32[16,32], index: 0, kind: input, shape index: {}]   ;;  %s2922_s1 = inlined_call_operand.vmem [shape: f32[32,64], index: 1, kind: input, shape index: {}]   ;;  %s2923_s2 = inlined_call_operand.vmem [shape: f32[1,64], index: 2, kind: input, shape index: {}]   ;;  %s2924_s3 = inlined_call_operand.vmem [shape: f32[64,32], index: 3, kind: input, shape index: {}]   ;;  %s2925_s4 = inlined_call_operand.vmem [shape: f32[1,32], index: 4, kind: input, shape index: {}]   ;;  %s2926_s5 = inlined_call_operand.vmem [shape: f32[32,16], index: 5, kind: input, shape index: {}]   ;;  %s2927_s6 = inlined_call_operand.vmem [shape: f32[1,16], index: 6, kind: input, shape index: {}]   ;;  %s2928_s7 = inlined_call_operand.hbm [shape: f32[16,16], index: 7, kind: output, shape index: {}]  }
   0x1   :  { %14 = vsyncpa [#allocation3 + $0x1], 0  ;;  %s2608_s24 = smov 0   ;;  %s2610_s25 = smov 0  }
   0x2   :  { %s2612_s26 = smov 0   ;;  %s2614_s27 = smov 0  }
   0x3 LB: > { %s2629_s28 = sadd.s32 4294967295, %s2562_s27   ;;  %s1908_s29 = sadd.s32 4294967294, %s2562_s27   ;;  %s2562_s27 = sphi %s2614_s27, %s2934_s27   ;;  %s2558_s26 = sphi %s2612_s26, %s2933_s26   ;;  %s2554_s25 = sphi %s2610_s25, %s2932_s25   ;;  %s2550_s24 = sphi %s2608_s24, %s2931_s24  }
   0x4   : > { %s2633_s30 = sadd.s32 1, %s2562_s27   ;;  %s179_s8 = sadd.s32 1, %s2558_s26 }
   0x5   : > { %s176_s9 = ssub.s32 %s2562_s27, %s2633_s30  ;;  %p189_p0 = scmp.ne.s32.totalorder %s2558_s26, %s2554_s25 }
   0x6   : > { %p177_p1 = scmp.eq.s32.totalorder %s176_s9, 0  ;;  %p190_p2 = scmp.eq.s32.totalorder %s2629_s28, 1 }
   0x7   : > { %p195_p3 = scmp.ne.s32.totalorder %s2554_s25, %s2550_s24  ;;  %p196_p4 = scmp.eq.s32.totalorder %s1908_s29, 1 }
   0x8   : > { %s2644_s10 = scalar_select %p177_p1, %s2558_s26, %s179_s8  }
   0x9   : > { %p2646_p5 = por %p190_p2, %p189_p0  ;;  %p2650_p6 = por %p196_p4, %p195_p3 }
   0xa   : > { %p1911_p7 = scmp.ge.s32.totalorder %s2562_s27, 1  ;;  %p239_p8 = scmp.lt.s32.totalorder %s2562_s27, 3 }
   0xc   : > { %p240_p9 = pnand %p1911_p7, %p239_p8 }
   0xd   : > { %v275_v0 = vld [vmem:[%s2922_s1] sm:$0xff] (!%p240_p9)  ;;  %v276_v1 = vld [vmem:[%s2922_s1 + $0x8] sm:$0xff] (!%p240_p9)  ;;  %v277_v2 = vld [vmem:[%s2922_s1 + $0x10] sm:$0xff] (!%p240_p9)  ;;  %v2564_v3 = vmov (!%p240_p9), 0.0|0.0   ;;  %vm2565_vm0 = vmmov (!%p240_p9), 0   ;;  %v2566_v8 = vmov (!%p240_p9), 0.0  }
   0xe   : > { %243 = sbr.rel (%p240_p9) target bundleno = 881 (0x371), region = 48  ;;  %2281 = vmatprep.subr.bf16.mxu0 (!%p240_p9), %v2564_v3  ;;  %v291_v4 = vand.u32 (!%p240_p9), 4294901760, %v275_v0  ;;  %v294_v5 = vand.u32 (!%p240_p9), 4294901760, %v276_v1  ;;  %v278_v6 = vld [vmem:[%s2922_s1 + $0x18] sm:$0xff] (!%p240_p9)  ;;  %v297_v7 = vand.u32 (!%p240_p9), 4294901760, %v277_v2  ;;  %2043 = vmatprep.mubr.msk.f32.mxu0 (!%p240_p9), %vm2565_vm0, %v2566_v8  ;;  %p270_p10 = scmp.lt.s32.totalorder (!%p240_p9), %s2629_s28, 1 }
   0xf   : > { %v300_v9 = vand.u32 (!%p240_p9), 4294901760, %v278_v6  ;;  %2317 = vmatprep.subr.bf16.mxu1 (!%p240_p9), %v2564_v3  ;;  %2117 = vmatprep.mubr.msk.f32.mxu1 (!%p240_p9), %vm2565_vm0, %v2566_v8  ;;  %vm286_vm1 = vcmask (!%p240_p9), 261120   ;;  %v776_v41 = vld [vmem:[%s2924_s3] sm:$0xff] (!%p240_p9)  ;;  %v777_v42 = vld [vmem:[%s2924_s3 + $0x8] sm:$0xff] (!%p240_p9)  ;;  %v778_v46 = vld [vmem:[%s2924_s3 + $0x10] sm:$0xff] (!%p240_p9)  ;;  %vm791_vm2 = vcmask (!%p240_p9), 523264  }
  0x10   : > { %v2675_v10 = vpack.c.bf16 (!%p240_p9), %v294_v5, %v291_v4  ;;  %v371_v11 = vsub.f32 (!%p240_p9), %v275_v0, %v291_v4  ;;  %v378_v12 = vsub.f32 (!%p240_p9), %v276_v1, %v294_v5  ;;  %v385_v13 = vsub.f32 (!%p240_p9), %v277_v2, %v297_v7  ;;  %v779_v47 = vld [vmem:[%s2924_s3 + $0x18] sm:$0xff] (!%p240_p9)  ;;  %v780_v51 = vld [vmem:[%s2924_s3 + $0x20] sm:$0xff] (!%p240_p9)  ;;  %v781_v52 = vld [vmem:[%s2924_s3 + $0x28] sm:$0xff] (!%p240_p9)  ;;  %s267_s9 = sand.u32 (!%p240_p9), 1, %s2554_s25   ;;  %s1918_s16 = sshll.u32 (!%p240_p9), %s2629_s28, 7 }
  0x11   : > { %v392_v14 = vsub.f32 (!%p240_p9), %v278_v6, %v300_v9  ;;  %v2285_v15 = vpack.c.bf16 (!%p240_p9), %v300_v9, %v297_v7  ;;  %v796_v43 = vand.u32 (!%p240_p9), 4294901760, %v776_v41  ;;  %v799_v44 = vand.u32 (!%p240_p9), 4294901760, %v777_v42  ;;  %v782_v58 = vld [vmem:[%s2924_s3 + $0x30] sm:$0xff] (!%p240_p9)  ;;  %v783_v59 = vld [vmem:[%s2924_s3 + $0x38] sm:$0xff] (!%p240_p9)  ;;  %s1912_s13 = sshll.u32 (!%p240_p9), %s267_s9, 3 }
  0x12   : > { %2283 = vmatpush3.bf16.msra.mxu0 (!%p240_p9), %v2675_v10  ;;  %v372_v16 = vand.u32 (!%p240_p9), 4294901760, %v371_v11  ;;  %v379_v17 = vand.u32 (!%p240_p9), 4294901760, %v378_v12  ;;  %v386_v19 = vand.u32 (!%p240_p9), 4294901760, %v385_v13  ;;  %v2294_v37 = vpack.c.bf16 (!%p240_p9), %v378_v12, %v371_v11  ;;  %s269_s17 = scalar_lea.vmem (!%p240_p9), [#allocation2], %s1912_s13 }
  0x13   : > { %2284 = vmatprep.subr.bf16.mxu0 (!%p240_p9), %v2564_v3  ;;  %v393_v23 = vand.u32 (!%p240_p9), 4294901760, %v392_v14  ;;  %v2297_v38 = vpack.c.bf16 (!%p240_p9), %v392_v14, %v385_v13  ;;  %v2715_v45 = vpack.c.bf16 (!%p240_p9), %v799_v44, %v796_v43  ;;  %v802_v48 = vand.u32 (!%p240_p9), 4294901760, %v778_v46  ;;  %s1849_s18 = sshll.u32 (!%p240_p9), %s269_s17, 4  ;;  %s2881_s18 = int_to_ptr.vmem [resolvable:$true] %s1849_s18 }
  0x14   : > { %v373_v21 = vsub.f32 (!%p240_p9), %v371_v11, %v372_v16  ;;  %v380_v22 = vsub.f32 (!%p240_p9), %v378_v12, %v379_v17  ;;  %v387_v28 = vsub.f32 (!%p240_p9), %v385_v13, %v386_v19  ;;  %v2306_v39 = vpack.c.bf16 (!%p240_p9), %v379_v17, %v372_v16  ;;  %s2500_s23 = scalar_lea.vmem (!%p240_p9), %s2881_s18, 128 }
  0x15   : > { %s271_s21 = scalar_select %p270_p10, %s2629_s28, 1  ;;  %v394_v29 = vsub.f32 %v392_v14, %v393_v23  ;;  %v2309_v40 = vpack.c.bf16 %v393_v23, %v386_v19  ;;  %2319 = vmatpush3.bf16.msra.mxu1 %v2715_v45  ;;  %v805_v49 = vand.u32 4294901760, %v779_v47  ;;  %v808_v53 = vand.u32 4294901760, %v780_v51 }
  0x16   : > { %2286 = vmatpush3.bf16.msra.mxu0 %v2285_v15  ;;  %v374_v26 = vand.u32 4294901760, %v373_v21  ;;  %v381_v27 = vand.u32 4294901760, %v380_v22  ;;  %v388_v33 = vand.u32 4294901760, %v387_v28  ;;  %2320 = vmatprep.subr.bf16.mxu1 %v2564_v3  ;;  %v811_v54 = vand.u32 4294901760, %v781_v52  ;;  %p2501_p11 = scmp.ne.s32.totalorder %s2881_s18, %s2500_s23  ;;  %s2567_s28 = smov [#allocation2]  }
  0x17   : > { %s1913_s22 = sshll.u32 %s271_s21, 3  ;;  %2287 = vmatprep.subr.bf16.mxu0 %v2564_v3  ;;  %v395_v34 = vand.u32 4294901760, %v394_v29  ;;  %v2725_v50 = vpack.c.bf16 %v805_v49, %v802_v48  ;;  %v2735_v55 = vsub.f32 %v776_v41, %v796_v43  ;;  %v2737_v56 = vsub.f32 %v777_v42, %v799_v44  ;;  %v1914_v43 = vld [vmem:[%s2923_s2] ss:$0 sm:$0xff]  ;;  %s2879_s21 = scalar_lea.hbm %s2928_s7, %s1918_s16 }
  0x18   : > { %s273_s8 = scalar_lea.vmem %s2921_s0, %s1913_s22  ;;  %v2288_v32 = vpack.c.bf16 %v381_v27, %v374_v26  ;;  %v2739_v57 = vpack.c.bf16 %v811_v54, %v808_v53  ;;  %v2747_v60 = vsub.f32 %v778_v46, %v802_v48  ;;  %v2749_v61 = vsub.f32 %v779_v47, %v805_v49  ;;  %s1836_s22 = scalar_lea.sflag [#allocation3], %s267_s9 }
  0x19   : > { %v274_v18 = vld [vmem:[%s273_s8] sm:$0xff]  ;;  %v2291_v36 = vpack.c.bf16 %v395_v34, %v388_v33  ;;  %2322 = vmatpush3.bf16.msra.mxu1 %v2725_v50  ;;  %v2752_v62 = vsub.f32 %v780_v51, %v808_v53  ;;  %v2754_v63 = vsub.f32 %v781_v52, %v811_v54  ;;  %v814_v0 = vand.u32 4294901760, %v782_v58  ;;  %p2502_p12 = pnand %p2501_p11, %p2646_p5  ;;  %s2504_s29 = sshll.u32 %s2567_s28, 4  ;;  %s2505_s29 = int_to_ptr.vmem [resolvable:$false] %s2504_s29 }
  0x1a   : > { %v288_v20 = vsel %vm286_vm1, %v274_v18, 0  ;;  %2323 = vmatprep.subr.bf16.mxu1 %v2564_v3  ;;  %v817_v1 = vand.u32 4294901760, %v783_v59  ;;  %v881_v2 = vand.u32 4294901760, %v2735_v55  ;;  %v888_v4 = vand.u32 4294901760, %v2737_v56  ;;  %s2506_s8 = scalar_lea.vmem %s2505_s29, 256  ;;  %p2507_p0 = scmp.lt.s32.totalorder %s2881_s18, %s2505_s29 }
  0x1b   : > { %v359_v24 = vand.u32 4294901760, %v288_v20  ;;  %v2761_v6 = vsub.f32 %v782_v58, %v814_v0  ;;  %v895_v12 = vand.u32 4294901760, %v2747_v60  ;;  %v902_v13 = vand.u32 4294901760, %v2749_v61  ;;  %p2503_p13 = pneg %p2502_p12  ;;  %p2508_p1 = scmp.lt.s32.totalorder %s2506_s8, %s2500_s23 }
  0x1c   : > { %v2759_v5 = vpack.c.bf16 %v817_v1, %v814_v0  ;;  %v2763_v7 = vsub.f32 %v783_v59, %v817_v1  ;;  %v882_v9 = vsub.f32 %v2735_v55, %v881_v2  ;;  %v916_v21 = vand.u32 4294901760, %v2754_v63 }
  0x1d   : > { %v360_v25 = vsub.f32 %v288_v20, %v359_v24  ;;  %2325 = vmatpush3.bf16.msra.mxu1 %v2739_v57  ;;  %v903_v16 = vsub.f32 %v2749_v61, %v902_v13  ;;  %v909_v20 = vand.u32 4294901760, %v2752_v62  ;;  %v923_v27 = vand.u32 4294901760, %v2761_v6  ;;  %p2509_p2 = por %p2508_p1, %p2507_p0 }
  0x1e   : > { %2326 = vmatprep.subr.bf16.mxu1 %v2564_v3  ;;  %v883_v11 = vand.u32 4294901760, %v882_v9  ;;  %v930_v28 = vand.u32 4294901760, %v2763_v7  ;;  %vm1833_vm3 = vcmask 130048  }
  0x1f   : > { %v361_v30 = vand.u32 4294901760, %v360_v25  ;;  %v904_v19 = vand.u32 4294901760, %v903_v16  ;;  %v910_v23 = vsub.f32 %v2752_v62, %v909_v20  ;;  %v2372_v41 = vpack.c.bf16 %v916_v21, %v909_v20  ;;  %p2510_p3 = pnand %p2509_p2, %p2503_p13 }
  0x20   : > { %v2375_v42 = vpack.c.bf16 %v930_v28, %v923_v27 }
  0x21   : > { %v362_v31 = vsub.f32 %v360_v25, %v361_v30  ;;  %2328 = vmatpush3.bf16.msra.mxu1 %v2759_v5 }
  0x22   : > { %2329 = vmatprep.subr.bf16.mxu1 %v2564_v3 }
  0x23   : > { %v363_v35 = vand.u32 4294901760, %v362_v31  ;;  %v931_v31 = vsub.f32 %v2763_v7, %v930_v28 }
  0x25   : > { %2044 = vmatmul.mubr.f32.vlgmr.msra.gmra.mrb[0].mxu0 %v363_v35  ;;  %v932_v33 = vand.u32 4294901760, %v931_v31  ;;  %v2342_v35 = vpack.c.bf16 %v2737_v56, %v2735_v55 }
  0x26   : > { %2289 = vmatpush3.bf16.msra.mxu0 %v2288_v32  ;;  %2054 = vmatprep.mubr.msk.f32.mxu0 %vm2565_vm0, %v2566_v8 }
  0x27   : > { %2290 = vmatprep.subr.bf16.mxu0 %v2564_v3 }
  0x2a   : > { %2292 = vmatpush3.bf16.msra.mxu0 %v2291_v36  ;;  %v2345_v36 = vpack.c.bf16 %v2749_v61, %v2747_v60 }
  0x2b   : > { %2293 = vmatprep.subr.bf16.mxu0 %v2564_v3 }
  0x2d   : > { %2055 = vmatmul.mubr.f32.vlgmr.msra.gmra.mrb[0].mxu0 %v359_v24 }
  0x2e   : > { %2295 = vmatpush3.bf16.msra.mxu0 %v2294_v37  ;;  %2065 = vmatprep.mubr.msk.f32.mxu0 %vm2565_vm0, %v2566_v8  ;;  %v2348_v37 = vpack.c.bf16 %v2754_v63, %v2752_v62  ;;  %v1336_v62 = vld [vmem:[%s2926_s5 + $0x18] sm:$0xff] }
  0x2f   : > { %2296 = vmatprep.subr.bf16.mxu0 %v2564_v3  ;;  %v1357_v0 = vand.u32 4294901760, %v1336_v62 }
  0x32   : > { %2298 = vmatpush3.bf16.msra.mxu0 %v2297_v38  ;;  %v2351_v38 = vpack.c.bf16 %v2763_v7, %v2761_v6 }
  0x33   : > { %2299 = vmatprep.subr.bf16.mxu0 %v2564_v3 }
  0x35   : > { %2066 = vmatmul.mubr.f32.vlgmr.msra.gmra.mrb[0].mxu0 %v360_v25  ;;  %v911_v25 = vand.u32 4294901760, %v910_v23 }
  0x36   : > { %2301 = vmatpush3.bf16.msra.mxu0 %v2675_v10  ;;  %2076 = vmatprep.mubr.msk.f32.mxu0 %vm2565_vm0, %v2566_v8 }
  0x37   : > { %2302 = vmatprep.subr.bf16.mxu0 %v2564_v3 }
  0x3a   : > { %2304 = vmatpush3.bf16.msra.mxu0 %v2285_v15 }
  0x3b   : > { %2305 = vmatprep.subr.bf16.mxu0 %v2564_v3 }
  0x3d   : > { %2077 = vmatmul.mubr.f32.vlgmr.msra.gmra.mrb[0].mxu0 %v361_v30  ;;  %v924_v30 = vsub.f32 %v2761_v6, %v923_v27  ;;  %v1449_v6 = vsub.f32 %v1336_v62, %v1357_v0 }
  0x3e   : > { %2307 = vmatpush3.bf16.msra.mxu0 %v2306_v39  ;;  %2087 = vmatprep.mubr.msk.f32.mxu0 %vm2565_vm0, %v2566_v8  ;;  %v2366_v39 = vpack.c.bf16 %v888_v4, %v881_v2 }
  0x3f   : > { %2308 = vmatprep.subr.bf16.mxu0 %v2564_v3  ;;  %v925_v32 = vand.u32 4294901760, %v924_v30 }
  0x41   : > { %v2339_v34 = vpack.c.bf16 %v932_v33, %v925_v32 }
  0x42   : > { %2310 = vmatpush3.bf16.msra.mxu0 %v2309_v40  ;;  %v2369_v40 = vpack.c.bf16 %v902_v13, %v895_v12 }
  0x43   : > { %2311 = vmatprep.subr.bf16.mxu0 %v2564_v3 }
  0x45   : > { %2088 = vmatmul.mubr.f32.vlgmr.msra.gmra.mrb[0].mxu0 %v359_v24 }
  0x46   : > { %2313 = vmatpush3.bf16.msra.mxu0 %v2675_v10  ;;  %2098 = vmatprep.mubr.msk.f32.mxu0 %vm2565_vm0, %v2566_v8  ;;  %v889_v10 = vsub.f32 %v2737_v56, %v888_v4  ;;  %v1334_v56 = vld [vmem:[%s2926_s5 + $0x8] sm:$0xff] }
  0x47   : > { %2314 = vmatprep.subr.bf16.mxu0 %v2564_v3  ;;  %v1351_v59 = vand.u32 4294901760, %v1334_v56 }
  0x48   : > { %v890_v14 = vand.u32 4294901760, %v889_v10 }
  0x49   : > { %v1435_v61 = vsub.f32 %v1334_v56, %v1351_v59 }
  0x4a   : > { %2316 = vmatpush3.bf16.msra.mxu0 %v2285_v15  ;;  %v896_v15 = vsub.f32 %v2747_v60, %v895_v12  ;;  %v2330_v17 = vpack.c.bf16 %v890_v14, %v883_v11  ;;  %v1450_v12 = vand.u32 4294901760, %v1449_v6 }
  0x4b   : > { %2389 = vmatprep.subr.bf16.mxu0 %v2564_v3  ;;  %v1436_v2 = vand.u32 4294901760, %v1435_v61 }
  0x4c   : > { %v897_v18 = vand.u32 4294901760, %v896_v15  ;;  %v1451_v15 = vsub.f32 %v1449_v6, %v1450_v12 }
  0x4d   : > { %2099 = vmatmul.mubr.f32.vlgmr.msra.gmra.mrb[0].mxu0 %v359_v24  ;;  %v917_v24 = vsub.f32 %v2754_v63, %v916_v21  ;;  %v1437_v9 = vsub.f32 %v1435_v61, %v1436_v2 }
  0x4e   : > { %2223 = vmatprep.mubr.msk.f32.mxu0 %vm2565_vm0, %v2566_v8  ;;  %v2333_v22 = vpack.c.bf16 %v904_v19, %v897_v18  ;;  %v1452_v18 = vand.u32 4294901760, %v1451_v15 }
  0x4f   : > { %v918_v26 = vand.u32 4294901760, %v917_v24  ;;  %v1438_v13 = vand.u32 4294901760, %v1437_v9  ;;  %v1915_v24 = vld [vmem:[%s2925_s4] ss:$0 sm:$0xff] }
  0x51   : > { %v2336_v29 = vpack.c.bf16 %v918_v26, %v911_v25 }
 0x120   : > { %v771_v44 = vpop.f32.mrb[0].mxu0 }
 0x121   : > { %v2425_v46 = vadd.f32 %v1914_v43, %v771_v44  ;;  %v2100_v47 = vpop.f32.mrb[1].mxu0 }
 0x123   : > { %v775_v48 = vmax.f32 %v2425_v46, 0.0 }
 0x125   : > { %v793_v49 = vsel %vm791_vm2, %v775_v48, 0 }
 0x126   : > { %v868_v51 = vand.u32 4294901760, %v793_v49 }
 0x128   : > { %v869_v52 = vsub.f32 %v793_v49, %v868_v51 }
 0x12a   : > { %v870_v53 = vand.u32 4294901760, %v869_v52 }
 0x12c   : > { %v871_v54 = vsub.f32 %v869_v52, %v870_v53 }
 0x12e   : > { %v872_v55 = vand.u32 4294901760, %v871_v54 }
 0x130   : > { %2118 = vmatmul.mubr.f32.vlgmr.msra.gmra.mrb[0].mxu1 %v872_v55 }
 0x131   : > { %2331 = vmatpush3.bf16.msra.mxu1 %v2330_v17  ;;  %2136 = vmatprep.mubr.msk.f32.mxu1 %vm2565_vm0, %v2566_v8 }
 0x132   : > { %2332 = vmatprep.subr.bf16.mxu1 %v2564_v3 }
 0x135   : > { %2334 = vmatpush3.bf16.msra.mxu1 %v2333_v22 }
 0x136   : > { %2335 = vmatprep.subr.bf16.mxu1 %v2564_v3 }
 0x139   : > { %2337 = vmatpush3.bf16.msra.mxu1 %v2336_v29 }
 0x13a   : > { %2338 = vmatprep.subr.bf16.mxu1 %v2564_v3 }
 0x13d   : > { %2340 = vmatpush3.bf16.msra.mxu1 %v2339_v34 }
 0x13e   : > { %2341 = vmatprep.subr.bf16.mxu1 %v2564_v3 }
 0x140   : > { %2137 = vmatmul.mubr.f32.vlgmr.msra.gmra.mrb[0].mxu1 %v868_v51 }
 0x141   : > { %2343 = vmatpush3.bf16.msra.mxu1 %v2342_v35  ;;  %2155 = vmatprep.mubr.msk.f32.mxu1 %vm2565_vm0, %v2566_v8  ;;  %v1916_v35 = vld [vmem:[%s2927_s6] ss:$0 sm:$0xff] }
 0x142   : > { %2344 = vmatprep.subr.bf16.mxu1 %v2564_v3 }
 0x145   : > { %2346 = vmatpush3.bf16.msra.mxu1 %v2345_v36 }
 0x146   : > { %2347 = vmatprep.subr.bf16.mxu1 %v2564_v3 }
 0x149   : > { %2349 = vmatpush3.bf16.msra.mxu1 %v2348_v37 }
 0x14a   : > { %2350 = vmatprep.subr.bf16.mxu1 %v2564_v3 }
 0x14d   : > { %2352 = vmatpush3.bf16.msra.mxu1 %v2351_v38 }
 0x14e   : > { %2353 = vmatprep.subr.bf16.mxu1 %v2564_v3 }
 0x150   : > { %2156 = vmatmul.mubr.f32.vlgmr.msra.gmra.mrb[0].mxu1 %v869_v52 }
 0x151   : > { %2355 = vmatpush3.bf16.msra.mxu1 %v2715_v45  ;;  %2174 = vmatprep.mubr.msk.f32.mxu1 %vm2565_vm0, %v2566_v8 }
 0x152   : > { %2356 = vmatprep.subr.bf16.mxu1 %v2564_v3 }
 0x155   : > { %2358 = vmatpush3.bf16.msra.mxu1 %v2725_v50 }
 0x156   : > { %2359 = vmatprep.subr.bf16.mxu1 %v2564_v3 }
 0x159   : > { %2361 = vmatpush3.bf16.msra.mxu1 %v2739_v57 }
 0x15a   : > { %2362 = vmatprep.subr.bf16.mxu1 %v2564_v3 }
 0x15d   : > { %2364 = vmatpush3.bf16.msra.mxu1 %v2759_v5 }
 0x15e   : > { %2365 = vmatprep.subr.bf16.mxu1 %v2564_v3 }
 0x160   : > { %2175 = vmatmul.mubr.f32.vlgmr.msra.gmra.mrb[0].mxu1 %v870_v53 }
 0x161   : > { %2367 = vmatpush3.bf16.msra.mxu1 %v2366_v39  ;;  %2193 = vmatprep.mubr.msk.f32.mxu1 %vm2565_vm0, %v2566_v8 }
 0x162   : > { %2368 = vmatprep.subr.bf16.mxu1 %v2564_v3 }
 0x165   : > { %2370 = vmatpush3.bf16.msra.mxu1 %v2369_v40 }
 0x166   : > { %2371 = vmatprep.subr.bf16.mxu1 %v2564_v3 }
 0x169   : > { %2373 = vmatpush3.bf16.msra.mxu1 %v2372_v41 }
 0x16a   : > { %2374 = vmatprep.subr.bf16.mxu1 %v2564_v3 }
 0x16d   : > { %2376 = vmatpush3.bf16.msra.mxu1 %v2375_v42 }
 0x16e   : > { %2377 = vmatprep.subr.bf16.mxu1 %v2564_v3 }
 0x170   : > { %2194 = vmatmul.mubr.f32.vlgmr.msra.gmra.mrb[0].mxu1 %v868_v51 }
 0x171   : > { %2379 = vmatpush3.bf16.msra.mxu1 %v2715_v45  ;;  %2212 = vmatprep.mubr.msk.f32.mxu1 %vm2565_vm0, %v2566_v8  ;;  %v1333_v45 = vld [vmem:[%s2926_s5] sm:$0xff] }
 0x172   : > { %2380 = vmatprep.subr.bf16.mxu1 %v2564_v3  ;;  %v1348_v58 = vand.u32 4294901760, %v1333_v45 }
 0x174   : > { %v1428_v60 = vsub.f32 %v1333_v45, %v1348_v58 }
 0x175   : > { %2382 = vmatpush3.bf16.msra.mxu1 %v2725_v50  ;;  %v2835_v50 = vpack.c.bf16 %v1351_v59, %v1348_v58 }
 0x176   : > { %2383 = vmatprep.subr.bf16.mxu1 %v2564_v3  ;;  %v1429_v1 = vand.u32 4294901760, %v1428_v60  ;;  %v2402_v20 = vpack.c.bf16 %v1435_v61, %v1428_v60 }
 0x177   : > { %2391 = vmatpush3.bf16.msra.mxu0 %v2835_v50 }
 0x178   : > { %2392 = vmatprep.subr.bf16.mxu0 %v2564_v3  ;;  %v1430_v7 = vsub.f32 %v1428_v60, %v1429_v1  ;;  %v2414_v22 = vpack.c.bf16 %v1436_v2, %v1429_v1 }
 0x179   : > { %2385 = vmatpush3.bf16.msra.mxu1 %v2739_v57  ;;  %v1335_v57 = vld [vmem:[%s2926_s5 + $0x10] sm:$0xff] }
 0x17a   : > { %2386 = vmatprep.subr.bf16.mxu1 %v2564_v3  ;;  %v1354_v63 = vand.u32 4294901760, %v1335_v57  ;;  %v1431_v10 = vand.u32 4294901760, %v1430_v7 }
 0x17c   : > { %v2393_v4 = vpack.c.bf16 %v1357_v0, %v1354_v63  ;;  %v2396_v16 = vpack.c.bf16 %v1438_v13, %v1431_v10 }
 0x17d   : > { %2388 = vmatpush3.bf16.msra.mxu1 %v2759_v5  ;;  %v1442_v5 = vsub.f32 %v1335_v57, %v1354_v63 }
 0x17e   : > { %2394 = vmatpush3.bf16.msra.mxu0 %v2393_v4 }
 0x17f   : > { %v1443_v11 = vand.u32 4294901760, %v1442_v5  ;;  %2395 = vmatprep.subr.bf16.mxu0 %v2564_v3  ;;  %v2405_v21 = vpack.c.bf16 %v1449_v6, %v1442_v5 }
 0x180   : > { %2213 = vmatmul.mubr.f32.vlgmr.msra.gmra.mrb[0].mxu1 %v868_v51 }
 0x181   : > { %v1444_v14 = vsub.f32 %v1442_v5, %v1443_v11  ;;  %v2417_v23 = vpack.c.bf16 %v1450_v12, %v1443_v11 }
 0x183   : > { %v1445_v17 = vand.u32 4294901760, %v1444_v14 }
 0x185   : > { %v2399_v19 = vpack.c.bf16 %v1452_v18, %v1445_v17 }
 0x253   : > { %v1328_v25 = vpop.f32.mrb[0].mxu1 }
 0x254   : > { %v2426_v26 = vadd.f32 %v1915_v24, %v1328_v25  ;;  %v2214_v27 = vpop.f32.mrb[1].mxu1 }
 0x256   : > { %v1332_v28 = vmax.f32 %v2426_v26, 0.0 }
 0x258   : > { %v1345_v29 = vsel %vm286_vm1, %v1332_v28, 0 }
 0x259   : > { %v1416_v30 = vand.u32 4294901760, %v1345_v29 }
 0x25b   : > { %v1417_v31 = vsub.f32 %v1345_v29, %v1416_v30 }
 0x25d   : > { %v1418_v32 = vand.u32 4294901760, %v1417_v31 }
 0x25f   : > { %v1419_v33 = vsub.f32 %v1417_v31, %v1418_v32 }
 0x261   : > { %v1420_v34 = vand.u32 4294901760, %v1419_v33 }
 0x263   : > { %2224 = vmatmul.mubr.f32.vlgmr.msra.gmra.mrb[2].mxu0 %v1420_v34 }
 0x264   : > { %2397 = vmatpush3.bf16.msra.mxu0 %v2396_v16  ;;  %2234 = vmatprep.mubr.msk.f32.mxu0 %vm2565_vm0, %v2566_v8 }
 0x265   : > { %2398 = vmatprep.subr.bf16.mxu0 %v2564_v3 }
 0x268   : > { %2400 = vmatpush3.bf16.msra.mxu0 %v2399_v19 }
 0x269   : > { %2401 = vmatprep.subr.bf16.mxu0 %v2564_v3 }
 0x26b   : > { %2235 = vmatmul.mubr.f32.vlgmr.msra.gmra.mrb[2].mxu0 %v1416_v30 }
 0x26c   : > { %2403 = vmatpush3.bf16.msra.mxu0 %v2402_v20  ;;  %2245 = vmatprep.mubr.msk.f32.mxu0 %vm2565_vm0, %v2566_v8 }
 0x26d   : > { %2404 = vmatprep.subr.bf16.mxu0 %v2564_v3 }
 0x270   : > { %2406 = vmatpush3.bf16.msra.mxu0 %v2405_v21 }
 0x271   : > { %2407 = vmatprep.subr.bf16.mxu0 %v2564_v3 }
 0x273   : > { %2246 = vmatmul.mubr.f32.vlgmr.msra.gmra.mrb[2].mxu0 %v1417_v31 }
 0x274   : > { %2409 = vmatpush3.bf16.msra.mxu0 %v2835_v50  ;;  %2256 = vmatprep.mubr.msk.f32.mxu0 %vm2565_vm0, %v2566_v8 }
 0x275   : > { %2410 = vmatprep.subr.bf16.mxu0 %v2564_v3 }
 0x278   : > { %2412 = vmatpush3.bf16.msra.mxu0 %v2393_v4 }
 0x279   : > { %2413 = vmatprep.subr.bf16.mxu0 %v2564_v3 }
 0x27b   : > { %2257 = vmatmul.mubr.f32.vlgmr.msra.gmra.mrb[2].mxu0 %v1418_v32 }
 0x27c   : > { %2415 = vmatpush3.bf16.msra.mxu0 %v2414_v22  ;;  %2267 = vmatprep.mubr.msk.f32.mxu0 %vm2565_vm0, %v2566_v8 }
 0x27d   : > { %2416 = vmatprep.subr.bf16.mxu0 %v2564_v3 }
 0x280   : > { %2418 = vmatpush3.bf16.msra.mxu0 %v2417_v23 }
 0x281   : > { %2419 = vmatprep.subr.bf16.mxu0 %v2564_v3 }
 0x283   : > { %2268 = vmatmul.mubr.f32.vlgmr.msra.gmra.mrb[2].mxu0 %v1416_v30 }
 0x284   : > { %2421 = vmatpush3.bf16.msra.mxu0 %v2835_v50  ;;  %2278 = vmatprep.mubr.msk.f32.mxu0 %vm2565_vm0, %v2566_v8 }
 0x285   : > { %2422 = vmatprep.subr.bf16.mxu0 %v2564_v3 }
 0x288   : > { %2424 = vmatpush3.bf16.msra.mxu0 %v2393_v4 }
 0x28b   : > { %2279 = vmatmul.mubr.f32.vlgmr.msra.gmra.mrb[2].mxu0 %v1416_v30 }
 0x35e   : > { %v1828_v36 = vpop.f32.mrb[2].mxu0 }
 0x35f   : > { %v2427_v37 = vadd.f32 %v1916_v35, %v1828_v36  ;;  %v2280_v38 = vpop.f32.mrb[3].mxu0 }
 0x361   : > { %v1832_v39 = vmax.f32 %v2427_v37, 0.0 }
 0x363   : > { %1834 = vst.msk [vmem:[%s269_s17] sm:$0xff] %vm1833_vm3, %v1832_v39 }
 0x364   : > { %2513 = shalt.err (!%p2510_p3)
}
 0x365   : > { %s2514_s9 = scalar_lea.hbm %s2879_s21, 128  ;;  %s2518_s15 = scalar_lea.hbm %s2928_s7, 256 }
 0x366   : > { %p2515_p4 = scmp.ne.s32.totalorder %s2879_s21, %s2514_s9  ;;  %p2519_p9 = scmp.lt.u32.totalorder %s2879_s21, %s2928_s7 }
 0x367   : > { %p2520_p10 = scmp.lt.u32.totalorder %s2518_s15, %s2514_s9  ;;  %p2522_p12 = scmp.lt.u32.totalorder %s2514_s9, %s2879_s21 }
 0x368   : > { %p2516_p7 = pnand %p2515_p4, %p2646_p5 }
 0x369   : > { %p2521_p11 = por %p2520_p10, %p2519_p9 }
 0x36a   : > { %p2517_p8 = pneg %p2516_p7 }
 0x36b   : > { %p2523_p13 = por %p2522_p12, %p2521_p11 }
 0x36d   : > { %p2524_p0 = pnand %p2523_p13, %p2517_p8 }
 0x36f   : > { %2527 = shalt.err (!%p2524_p0)
}
 0x370   : > { %2458 = dma.vmem_to_hbm [thread:$0]  (%p2646_p5), %s2881_s18, 128, %s2879_s21, %s1836_s22  }
 0x371 PF: > { %p2464_p1 = scmp.ge.s32.totalorder %s2562_s27, 2  ;;  %s1861_s19 = sand.u32 1, %s2550_s24  }
 0x372   : > { %s1862_s20 = scalar_lea.sflag [#allocation3], %s1861_s19 }
 0x373   : > { %p2461_p2 = pnand %p2464_p1, %p2650_p6 }
 0x375   : > { %2545 = dma.done.wait (!%p2461_p2), %s1862_s20, 128  }
 0x376   : > { %2547 = vsyncadd (!%p2461_p2), %s1862_s20, 4294967168  ;;  %p17_p3 = scmp.ge.s32.totalorder %s2633_s30, 4   ;;  %s2931_s24 = smov %s2554_s25 }
 0x377   : > { %s2932_s25 = smov %s2558_s26  ;;  %s2933_s26 = smov %s2644_s10 }
 0x378   : > { %s2934_s27 = smov %s2633_s30  ;;  %19 = sbr.rel (!%p17_p3) target bundleno = 3 (0x3), region = 83 }
 0x37f   :  { %1867 = vsyncpa [#allocation3], 1 }
 0x380   :  { %1869 = vsyncpa [#allocation3 + $0x1], 1 }

</bundles_post_ra>
